<compile_context>
chip_gen: v7x
topology: tpu7x:2x2x1
jax: 0.10.0
libtpu: 0.0.40
codegen_flags: <defaults>
</compile_context>

<pallas_src>
import jax
import jax.numpy as jnp
from jax import lax
from jax.experimental import pallas as pl
from jax.experimental.pallas import tpu as pltpu


def _sobelxy_kernel(x_ref, halo_ref, o_ref):
    # x_ref:    (BN, TH, W)      image rows of this tile (W lane-dense)
    # halo_ref: (BN, 1, 2, W)    row just above / below the tile (zero at border)
    # o_ref:    (BN, TH, W)      |Gx| + |Gy|
    BN, TH, W = o_ref.shape

    x = x_ref[...].astype(jnp.float32)          # (BN, TH, W)
    halo = halo_ref[...].astype(jnp.float32)    # (BN, 1, 2, W)
    top = halo[:, 0, 0:1, :]                    # (BN, 1, W) row above tile
    bot = halo[:, 0, 1:2, :]                    # (BN, 1, W) row below tile

    # Rows [-1 .. TH] of the output window (1-row vertical halo).
    xe = jnp.concatenate([top, x, bot], axis=1)  # (BN, TH+2, W)

    # Horizontal (lane direction) +-1 neighbours with zero at the image border.
    # XLU rotate + VPU select; no lane-offset slice copies.  The iota / compare
    # / select are VPU filler hidden under the HBM stalls of this mem-bound
    # kernel.
    col = lax.broadcasted_iota(jnp.int32, xe.shape, 2)
    left = jnp.where(col == 0, 0.0, pltpu.roll(xe, 1, axis=2))           # x(:, j-1)
    right = jnp.where(col == W - 1, 0.0, pltpu.roll(xe, W - 1, axis=2))  # x(:, j+1)

    # Separable Sobel (cross-correlation, matching F.conv2d, padding=1):
    #   kernelx = [1,2,1]^T (x) [-1,0,1]  ->  Gx = vsmooth(hdiff)
    #   kernely = [1,0,-1]^T (x) [1,2,1]  ->  Gy = vdiff(hsmooth)
    hdiff = right - left
    hsmooth = left + 2.0 * xe + right

    gx = hdiff[:, 0:TH, :] + 2.0 * hdiff[:, 1:TH + 1, :] + hdiff[:, 2:TH + 2, :]
    gy = hsmooth[:, 0:TH, :] - hsmooth[:, 2:TH + 2, :]

    o_ref[...] = (jnp.abs(gx) + jnp.abs(gy)).astype(o_ref.dtype)


def _pick_row_tile(H, W, itemsize, target_bytes):
    """Largest TH that divides H, is a multiple of 8 and keeps TH*W*itemsize
    under target_bytes; falls back to the full height."""
    rows = max(8, target_bytes // max(1, W * itemsize))
    if rows >= H:
        return H
    for th in range(int(rows), 7, -1):
        if H % th == 0 and th % 8 == 0:
            return th
    return H


def _pick_batch_tile(N, TH, W, itemsize, target_bytes):
    per_image = TH * W * itemsize
    bn = int(max(1, min(N, target_bytes // max(1, per_image))))
    while N % bn:
        bn -= 1
    return bn


def sobelxy(x, *, tile_bytes=1 << 20):
    """x: (N, 1, H, W) float -> (N, 1, H, W), |sobel_x| + |sobel_y| (padding=1)."""
    N, C, H, W = x.shape
    assert C == 1, "Sobelxy weight shape (1,1,3,3) requires a single input channel"
    dtype = x.dtype
    itemsize = jnp.dtype(dtype).itemsize

    # Lane-dense width for the kernel.  Images whose W is already a multiple of
    # 128 (the common real-image case) pay no padding pass at all.
    Wp = ((W + 127) // 128) * 128
    x3 = x.reshape(N, H, W)
    if Wp != W:
        x3 = jnp.pad(x3, ((0, 0), (0, 0), (0, Wp - W)))

    TH = _pick_row_tile(H, Wp, itemsize, tile_bytes)
    BN = _pick_batch_tile(N, TH, Wp, itemsize, tile_bytes)
    R = H // TH

    # Per-tile vertical halo: the single image row directly above / below each
    # row tile (zeros at the top/bottom border).  Touches only 2 rows per tile.
    xr = x3.reshape(N, R, TH, Wp)
    zero_row = jnp.zeros((N, 1, Wp), dtype)
    top_rows = jnp.concatenate([zero_row, xr[:, : R - 1, TH - 1, :]], axis=1)  # (N,R,Wp)
    bot_rows = jnp.concatenate([xr[:, 1:, 0, :], zero_row], axis=1)            # (N,R,Wp)
    halo = jnp.stack([top_rows, bot_rows], axis=2)                              # (N,R,2,Wp)

    out = pl.pallas_call(
        _sobelxy_kernel,
        out_shape=jax.ShapeDtypeStruct((N, H, Wp), dtype),
        grid_spec=pltpu.PrefetchScalarGridSpec(
            num_scalar_prefetch=0,
            grid=(N // BN, R),
            in_specs=[
                pl.BlockSpec((BN, TH, Wp), lambda n, r: (n, r, 0)),
                pl.BlockSpec((BN, 1, 2, Wp), lambda n, r: (n, r, 0, 0)),
            ],
            out_specs=pl.BlockSpec((BN, TH, Wp), lambda n, r: (n, r, 0)),
        ),
        compiler_params=pltpu.CompilerParams(
            dimension_semantics=("parallel", "parallel"),
            # ~1 MiB blocks: double-buffered in/out + stencil temporaries stay
            # well under scoped VMEM everywhere (incl. v7x's 64 MiB physical);
            # raise v5e's 16 MiB default for extra headroom.
            vmem_limit_bytes=32 * 1024 * 1024,
        ),
    )(x3, halo)

    return out[:, :, :W].reshape(N, 1, H, W)


def _sobelxy_reference(x):
    """Pure-JAX reference via lax.conv (mirrors F.conv2d with padding=1)."""
    kx = jnp.array([[-1., 0., 1.], [-2., 0., 2.], [-1., 0., 1.]],
                   dtype=x.dtype)[None, None]
    ky = jnp.array([[1., 2., 1.], [0., 0., 0.], [-1., -2., -1.]],
                   dtype=x.dtype)[None, None]
    dn = lax.conv_dimension_numbers(x.shape, kx.shape, ("NCHW", "OIHW", "NCHW"))
    sx = lax.conv_general_dilated(x, kx, (1, 1), ((1, 1), (1, 1)),
                                  dimension_numbers=dn,
                                  precision=lax.Precision.HIGHEST)
    sy = lax.conv_general_dilated(x, ky, (1, 1), ((1, 1), (1, 1)),
                                  dimension_numbers=dn,
                                  precision=lax.Precision.HIGHEST)
    return jnp.abs(sx) + jnp.abs(sy)


if __name__ == "__main__":
    key = jax.random.PRNGKey(0)

    # 1) Lane-dense width (no padding pass), single row tile, packed batch.
    x1 = jax.random.normal(key, (2, 1, 16, 128), dtype=jnp.float32)
    out1 = jax.block_until_ready(sobelxy(x1))
    assert out1.shape == x1.shape
    assert jnp.allclose(out1, _sobelxy_reference(x1), atol=1e-4, rtol=1e-4), \
        "mismatch vs reference (lane-dense case)"

    # 2) Small ragged width (pad-to-128 + crop path), original test shape.
    x2 = jax.random.normal(jax.random.fold_in(key, 1), (2, 1, 16, 16),
                           dtype=jnp.float32)
    out2 = jax.block_until_ready(sobelxy(x2))
    assert out2.shape == x2.shape
    assert jnp.allclose(out2, _sobelxy_reference(x2), atol=1e-4, rtol=1e-4), \
        "mismatch vs reference (ragged-width case)"

    # 3) Forced multi-tile rows: exercises the per-tile halo and the 2-D grid.
    x3 = jax.random.normal(jax.random.fold_in(key, 2), (2, 1, 64, 128),
                           dtype=jnp.float32)
    out3 = jax.block_until_ready(sobelxy(x3, tile_bytes=8 * 128 * 4))
    assert out3.shape == x3.shape
    assert jnp.allclose(out3, _sobelxy_reference(x3), atol=1e-4, rtol=1e-4), \
        "mismatch vs reference (row-tiled case)"

    print("KERNEL_OK")
</pallas_src>

<mosaic_0001>
module attributes {stable_mosaic.version = 11 : i64} {
  func.func @_sobelxy_kernel(%arg0: i32, %arg1: i32, %arg2: memref<2x16x128xf32, #tpu.memory_space<vmem>>, %arg3: memref<2x1x2x128xf32, #tpu.memory_space<vmem>>, %arg4: memref<2x16x128xf32, #tpu.memory_space<vmem>>) attributes {dimension_semantics = [#tpu.dimension_semantics<parallel>, #tpu.dimension_semantics<parallel>], iteration_bounds = array<i64: 1, 1>, scalar_prefetch = 0 : i64, scratch_operands = 0 : i64, tpu.core_type = #tpu.core_type<tc>, window_params = [{transform_indices = @transform_0, window_bounds = array<i64: 2, 16, 128>}, {transform_indices = @transform_1, window_bounds = array<i64: 2, 1, 2, 128>}, {transform_indices = @transform_2, window_bounds = array<i64: 2, 16, 128>}]} {
    %c0 = arith.constant 0 : index
    %c0_0 = arith.constant 0 : index
    %c0_1 = arith.constant 0 : index
    %0 = vector.load %arg2[%c0, %c0_0, %c0_1] : memref<2x16x128xf32, #tpu.memory_space<vmem>>, vector<2x16x128xf32>
    %c0_2 = arith.constant 0 : index
    %c0_3 = arith.constant 0 : index
    %c0_4 = arith.constant 0 : index
    %c0_5 = arith.constant 0 : index
    %1 = vector.load %arg3[%c0_2, %c0_3, %c0_4, %c0_5] : memref<2x1x2x128xf32, #tpu.memory_space<vmem>>, vector<2x1x2x128xf32>
    %2 = vector.extract_strided_slice %1 {offsets = [0, 0, 0, 0], sizes = [2, 1, 1, 128], strides = [1, 1, 1, 1]} : vector<2x1x2x128xf32> to vector<2x1x1x128xf32>
    %3 = vector.shape_cast %2 : vector<2x1x1x128xf32> to vector<2x1x128xf32>
    %4 = vector.extract_strided_slice %1 {offsets = [0, 0, 1, 0], sizes = [2, 1, 1, 128], strides = [1, 1, 1, 1]} : vector<2x1x2x128xf32> to vector<2x1x1x128xf32>
    %5 = vector.shape_cast %4 : vector<2x1x1x128xf32> to vector<2x1x128xf32>
    %6 = tpu.concatenate %3, %0, %5 in 1 : vector<2x1x128xf32>, vector<2x16x128xf32>, vector<2x1x128xf32> -> vector<2x18x128xf32>
    %7 = tpu.iota {dimensions = array<i32: 2>} : vector<2x18x128xi32>
    %c0_i32 = arith.constant 0 : i32
    %8 = vector.broadcast %c0_i32 : i32 to vector<2x18x128xi32>
    %9 = arith.cmpi eq, %7, %8 : vector<2x18x128xi32>
    %c1_i32 = arith.constant 1 : i32
    %10 = tpu.dynamic_rotate %6 by %c1_i32 dim 2 : vector<2x18x128xf32>, i32 -> vector<2x18x128xf32>
    %cst = arith.constant 0.000000e+00 : f32
    %11 = vector.broadcast %cst : f32 to vector<2x18x128xf32>
    %12 = arith.select %9, %11, %10 : vector<2x18x128xi1>, vector<2x18x128xf32>
    %c127_i32 = arith.constant 127 : i32
    %13 = vector.broadcast %c127_i32 : i32 to vector<2x18x128xi32>
    %14 = arith.cmpi eq, %7, %13 : vector<2x18x128xi32>
    %c127_i32_6 = arith.constant 127 : i32
    %15 = tpu.dynamic_rotate %6 by %c127_i32_6 dim 2 : vector<2x18x128xf32>, i32 -> vector<2x18x128xf32>
    %cst_7 = arith.constant 0.000000e+00 : f32
    %16 = vector.broadcast %cst_7 : f32 to vector<2x18x128xf32>
    %17 = arith.select %14, %16, %15 : vector<2x18x128xi1>, vector<2x18x128xf32>
    %18 = arith.subf %17, %12 : vector<2x18x128xf32>
    %cst_8 = arith.constant 2.000000e+00 : f32
    %19 = vector.broadcast %cst_8 : f32 to vector<2x18x128xf32>
    %20 = arith.mulf %19, %6 : vector<2x18x128xf32>
    %21 = arith.addf %12, %20 : vector<2x18x128xf32>
    %22 = arith.addf %21, %17 : vector<2x18x128xf32>
    %23 = vector.extract_strided_slice %18 {offsets = [0, 0, 0], sizes = [2, 16, 128], strides = [1, 1, 1]} : vector<2x18x128xf32> to vector<2x16x128xf32>
    %24 = vector.extract_strided_slice %18 {offsets = [0, 1, 0], sizes = [2, 16, 128], strides = [1, 1, 1]} : vector<2x18x128xf32> to vector<2x16x128xf32>
    %cst_9 = arith.constant 2.000000e+00 : f32
    %25 = vector.broadcast %cst_9 : f32 to vector<2x16x128xf32>
    %26 = arith.mulf %25, %24 : vector<2x16x128xf32>
    %27 = arith.addf %23, %26 : vector<2x16x128xf32>
    %28 = vector.extract_strided_slice %18 {offsets = [0, 2, 0], sizes = [2, 16, 128], strides = [1, 1, 1]} : vector<2x18x128xf32> to vector<2x16x128xf32>
    %29 = arith.addf %27, %28 : vector<2x16x128xf32>
    %30 = vector.extract_strided_slice %22 {offsets = [0, 0, 0], sizes = [2, 16, 128], strides = [1, 1, 1]} : vector<2x18x128xf32> to vector<2x16x128xf32>
    %31 = vector.extract_strided_slice %22 {offsets = [0, 2, 0], sizes = [2, 16, 128], strides = [1, 1, 1]} : vector<2x18x128xf32> to vector<2x16x128xf32>
    %32 = arith.subf %30, %31 : vector<2x16x128xf32>
    %33 = math.absf %29 : vector<2x16x128xf32>
    %34 = math.absf %32 : vector<2x16x128xf32>
    %35 = arith.addf %33, %34 : vector<2x16x128xf32>
    %c0_10 = arith.constant 0 : index
    %c0_11 = arith.constant 0 : index
    %c0_12 = arith.constant 0 : index
    %36 = vector.load %arg4[%c0_10, %c0_11, %c0_12] : memref<2x16x128xf32, #tpu.memory_space<vmem>>, vector<2x16x128xf32>
    tpu.vector_store %arg4[%c0_10, %c0_11, %c0_12], %35 {strides = array<i32>} : memref<2x16x128xf32, #tpu.memory_space<vmem>>, vector<2x16x128xf32>,
    return
  }
  func.func @transform_0(%arg0: i32, %arg1: i32) -> (i32, i32, i32) {
    %c0_i32 = arith.constant 0 : i32
    %c0_i32_0 = arith.constant 0 : i32
    return %arg0, %arg1, %c0_i32 : i32, i32, i32
  }
  func.func @transform_1(%arg0: i32, %arg1: i32) -> (i32, i32, i32, i32) {
    %c0_i32 = arith.constant 0 : i32
    %c0_i32_0 = arith.constant 0 : i32
    %c0_i32_1 = arith.constant 0 : i32
    return %arg0, %arg1, %c0_i32, %c0_i32_0 : i32, i32, i32, i32
  }
  func.func @transform_2(%arg0: i32, %arg1: i32) -> (i32, i32, i32) {
    %c0_i32 = arith.constant 0 : i32
    %c0_i32_0 = arith.constant 0 : i32
    return %arg0, %arg1, %c0_i32 : i32, i32, i32
  }
}

</mosaic_0001>

<bundles_post_ra>
// kernel: tpu_custom_call.1
= control target key start
LH: loop header
LB: loop body
LE: loop exit
PB: predicated region body
PF: predicated region fallthrough
CT: control target
= control target key end

     0   :  { %7 = vsyncpa [#allocation3], 0  ;;  %s442_s0 = inlined_call_operand.hbm [shape: f32[2,16,128], index: 0, kind: input, shape index: {}]   ;;  %s443_s1 = inlined_call_operand.hbm [shape: f32[2,1,2,128], index: 1, kind: input, shape index: {}]   ;;  %s444_s2 = inlined_call_operand.hbm [shape: f32[2,16,128], index: 2, kind: output, shape index: {}]  }
   0x1   :  { %8 = vsyncpa [#allocation6], 0 }
   0x2   :  { %9 = vsyncpa [#allocation4], 0  ;;  %s326_s9 = smov [#allocation2]   ;;  %s254_s13 = scalar_lea.hbm %s442_s0, 512 }
   0x3   :  { %s15_s10 = sshll.u32 %s326_s9, 4  ;;  %p255_p0 = scmp.ne.s32.totalorder %s442_s0, %s254_s13  ;;  %s16_s10 = int_to_ptr.vmem [resolvable:$true] %s15_s10 }
   0x4   :  { %p258_p1 = scmp.lt.u32.totalorder %s254_s13, %s442_s0 }
   0x6   :  { %p260_p2 = pnand %p258_p1, %p255_p0 }
   0x8   :  { %263 = shalt.err (!%p260_p2)
}
   0x9   :  { %s264_s18 = scalar_lea.vmem %s16_s10, 512  ;;  %p269_p4 = scmp.lt.s32.totalorder %s16_s10, %s16_s10 }
   0xa   :  { %p265_p3 = scmp.ne.s32.totalorder %s16_s10, %s264_s18  ;;  %p270_p5 = scmp.lt.s32.totalorder %s264_s18, %s264_s18 }
   0xc   :  { %p271_p6 = por %p270_p5, %p269_p4 }
   0xe   :  { %p272_p7 = pnand %p271_p6, %p265_p3 }
  0x10   :  { %275 = shalt.err (!%p272_p7)
}
  0x11   :  { %s327_s19 = smov 128   ;;  %s328_s20 = smov 8  }
  0x12   :  { %21 = dma.hbm_to_vmem [thread:$0]  %s442_s0, 512, %s16_s10, [#allocation3], %s327_s19, %s327_s19, %s328_s20  }
  0x13   :  { %s329_s23 = smov [#allocation5]   ;;  %s276_s27 = scalar_lea.hbm %s443_s1, 64 }
  0x14   :  { %s27_s24 = sshll.u32 %s329_s23, 4  ;;  %p277_p8 = scmp.ne.s32.totalorder %s443_s1, %s276_s27  ;;  %s28_s24 = int_to_ptr.vmem [resolvable:$true] %s27_s24 }
  0x15   :  { %p280_p9 = scmp.lt.u32.totalorder %s276_s27, %s443_s1 }
  0x17   :  { %p282_p10 = pnand %p280_p9, %p277_p8 }
  0x19   :  { %285 = shalt.err (!%p282_p10)
}
  0x1a   :  { %s286_s4 = scalar_lea.vmem %s28_s24, 64  ;;  %p291_p12 = scmp.lt.s32.totalorder %s28_s24, %s28_s24 }
  0x1b   :  { %p287_p11 = scmp.ne.s32.totalorder %s28_s24, %s286_s4  ;;  %p292_p13 = scmp.lt.s32.totalorder %s286_s4, %s286_s4 }
  0x1d   :  { %p293_p0 = por %p292_p13, %p291_p12 }
  0x1f   :  { %p294_p1 = pnand %p293_p0, %p287_p11 }
  0x21   :  { %297 = shalt.err (!%p294_p1)
}
  0x22   :  { %s330_s0 = smov 32   ;;  %s331_s5 = smov 2  }
  0x23   :  { %33 = dma.hbm_to_vmem [thread:$0]  %s443_s1, 64, %s28_s24, [#allocation6], %s330_s0, %s330_s0, %s331_s5  }
  0x24   :  { %320 = dma.done.wait [#allocation3], 512  }
  0x25   :  { %321 = vsyncadd [#allocation3], 4294966784 }
  0x26   :  { %322 = dma.done.wait [#allocation6], 64  }
  0x27   :  { %323 = vsyncadd [#allocation6], 4294967232  ;;  %v41_v0 = vld [vmem:[#allocation2 + $0x8] sm:$0xff]  ;;  %v44_v1 = vld [vmem:[#allocation5] sm:$0x3]  ;;  %vm50_vm0 = vcmask 1040384   ;;  %v67_v16 = vlaneseq }
  0x28   :  { %v40_v2 = vld [vmem:[#allocation2] sm:$0xff]  ;;  %v52_v3 = vrot.slane %v41_v0, 7  ;;  %v42_v5 = vld [vmem:[#allocation2 + $0x10] sm:$0xff]  ;;  %v43_v8 = vld [vmem:[#allocation2 + $0x18] sm:$0xff]  ;;  %s332_s8 = smov 1   ;;  %s333_s1 = smov 127  }
  0x29   :  { %v51_v4 = vrot.slane %v40_v2, 7  ;;  %v45_v6 = vld [vmem:[#allocation5 + $0x2] sm:$0x3]  ;;  %v54_v7 = vrot.slane %v42_v5, 7  ;;  %v55_v13 = vrot.slane %v43_v8, 7  ;;  %v383_v19 = vand.u32 127, %v67_v16 }
  0x2a   :  { %v65_v9 = vsel %vm50_vm0, %v52_v3, %v44_v1  ;;  %vm168_vm3 = vcmask 1045504   ;;  %vm143_vm4 = vcmask 1046528   ;;  %s334_s9 = smov [#allocation7]  }
  0x2b   :  { %v63_v10 = vsel %vm50_vm0, %v44_v1, %v51_v4  ;;  %74 = vrot.lane.b32.xlu1 %v65_v9, %s332_s8  ;;  %v64_v11 = vsel %vm50_vm0, %v45_v6, %v54_v7  ;;  %v53_v12 = vsel %vm50_vm0, %v51_v4, %v52_v3  ;;  %v66_v14 = vsel %vm50_vm0, %v55_v13, %v45_v6  ;;  %s232_s10 = sshll.u32 %s334_s9, 4  ;;  %s233_s10 = int_to_ptr.vmem [resolvable:$true] %s232_s10 }
  0x2c   :  { %70 = vrot.lane.b32.xlu0 %v63_v10, %s332_s8  ;;  %v56_v15 = vsel %vm50_vm0, %v54_v7, %v55_v13  ;;  %vm69_vm1 = vcmp.eq.s32.totalorder %v383_v19, 0  ;;  %v113_v22 = vmul.f32 2.0, %v63_v10  ;;  %v114_v23 = vmul.f32 2.0, %v53_v12  ;;  %s298_s11 = scalar_lea.vmem %s233_s10, 512  ;;  %p303_p3 = scmp.lt.s32.totalorder %s233_s10, %s233_s10 }
  0x2d   :  { %vm88_vm2 = vcmp.eq.s32.totalorder %v383_v19, 127  ;;  %v115_v28 = vmul.f32 2.0, %v65_v9  ;;  %v116_v29 = vmul.f32 2.0, %v64_v11  ;;  %v118_v33 = vmul.f32 2.0, %v66_v14  ;;  %p299_p2 = scmp.ne.s32.totalorder %s233_s10, %s298_s11  ;;  %p304_p4 = scmp.lt.s32.totalorder %s298_s11, %s298_s11 }
  0x2e   :  { %v117_v36 = vmul.f32 2.0, %v56_v15 }
  0x2f   :  { %76 = vrot.lane.b32.xlu1 %v64_v11, %s332_s8  ;;  %p305_p5 = por %p304_p4, %p303_p3 }
  0x30   :  { %72 = vrot.lane.b32.xlu0 %v53_v12, %s332_s8 }
  0x31   :  { %p306_p6 = pnand %p305_p5, %p299_p2 }
  0x33   :  { %80 = vrot.lane.b32.xlu1 %v66_v14, %s332_s8 }
  0x34   :  { %78 = vrot.lane.b32.xlu0 %v56_v15, %s332_s8 }
  0x37   :  { %91 = vrot.lane.b32.xlu1 %v53_v12, %s333_s1 }
  0x38   :  { %89 = vrot.lane.b32.xlu0 %v63_v10, %s333_s1 }
  0x3b   :  { %95 = vrot.lane.b32.xlu1 %v64_v11, %s333_s1 }
  0x3c   :  { %93 = vrot.lane.b32.xlu0 %v65_v9, %s333_s1 }
  0x3f   :  { %99 = vrot.lane.b32.xlu1 %v66_v14, %s333_s1 }
  0x40   :  { %97 = vrot.lane.b32.xlu0 %v56_v15, %s333_s1 }
  0x9d   :  { %v75_v17 = vpop.permute.xlu1 %74 }
  0x9e   :  { %v71_v18 = vpop.permute.xlu0 %70  ;;  %v84_v30 = vsel %vm69_vm1, 0.0, %v75_v17 }
  0x9f   :  { %v82_v26 = vsel %vm69_vm1, 0.0, %v71_v18  ;;  %v121_v43 = vadd.f32 %v115_v28, %v84_v30 }
  0xa0   :  { %v119_v31 = vadd.f32 %v113_v22, %v82_v26 }
  0xa1   :  { %v77_v20 = vpop.permute.xlu1 %76 }
  0xa2   :  { %v73_v21 = vpop.permute.xlu0 %72  ;;  %v85_v44 = vsel %vm69_vm1, 0.0, %v77_v20 }
  0xa3   :  { %v83_v27 = vsel %vm69_vm1, 0.0, %v73_v21  ;;  %v122_v60 = vadd.f32 %v116_v29, %v85_v44 }
  0xa4   :  { %v120_v32 = vadd.f32 %v114_v23, %v83_v27 }
  0xa5   :  { %v81_v24 = vpop.permute.xlu1 %80 }
  0xa6   :  { %v79_v25 = vpop.permute.xlu0 %78  ;;  %v87_v45 = vsel %vm69_vm1, 0.0, %v81_v24 }
  0xa7   :  { %v86_v46 = vsel %vm69_vm1, 0.0, %v79_v25  ;;  %v124_v0 = vadd.f32 %v118_v33, %v87_v45 }
  0xa8   :  { %v123_v4 = vadd.f32 %v117_v36, %v86_v46 }
  0xa9   :  { %v92_v34 = vpop.permute.xlu1 %91 }
  0xaa   :  { %v90_v35 = vpop.permute.xlu0 %89  ;;  %v102_v37 = vsel %vm88_vm2, 0.0, %v92_v34 }
  0xab   :  { %v101_v38 = vsel %vm88_vm2, 0.0, %v90_v35  ;;  %v108_v39 = vsub.f32 %v102_v37, %v83_v27  ;;  %v397_v40 = vadd.f32 %v120_v32, %v102_v37 }
  0xac   :  { %v107_v41 = vsub.f32 %v101_v38, %v82_v26  ;;  %v125_v42 = vadd.f32 %v119_v31, %v101_v38 }
  0xad   :  { %v132_v47 = vmul.f32 2.0, %v108_v39  ;;  %v194_v48 = vrot.slane %v397_v40, 2  ;;  %v96_v50 = vpop.permute.xlu1 %95  ;;  %v170_v52 = vrot.slane %v108_v39, 2 }
  0xae   :  { %v131_v49 = vmul.f32 2.0, %v107_v41  ;;  %v94_v51 = vpop.permute.xlu0 %93  ;;  %v193_v53 = vrot.slane %v125_v42, 2  ;;  %v104_v54 = vsel %vm88_vm2, 0.0, %v96_v50  ;;  %v169_v58 = vrot.slane %v107_v41, 2 }
  0xaf   :  { %v103_v55 = vsel %vm88_vm2, 0.0, %v94_v51  ;;  %v145_v56 = vrot.slane %v132_v47, 1  ;;  %v110_v59 = vsub.f32 %v104_v54, %v85_v44  ;;  %v128_v6 = vadd.f32 %v122_v60, %v104_v54 }
  0xb0   :  { %v144_v57 = vrot.slane %v131_v49, 1  ;;  %v195_v61 = vsel %vm168_vm3, %v193_v53, %v194_v48  ;;  %v109_v62 = vsub.f32 %v103_v55, %v84_v30  ;;  %v127_v63 = vadd.f32 %v121_v43, %v103_v55 }
  0xb1   :  { %v207_v2 = vsub.f32 %v125_v42, %v195_v61  ;;  %v100_v3 = vpop.permute.xlu1 %99  ;;  %v171_v9 = vsel %vm168_vm3, %v169_v58, %v170_v52  ;;  %v134_v10 = vmul.f32 2.0, %v110_v59  ;;  %v198_v19 = vrot.slane %v128_v6, 2 }
  0xb2   :  { %v146_v1 = vsel %vm143_vm4, %v144_v57, %v145_v56  ;;  %v133_v7 = vmul.f32 2.0, %v109_v62  ;;  %v98_v8 = vpop.permute.xlu0 %97  ;;  %v196_v11 = vrot.slane %v127_v63, 2  ;;  %v106_v12 = vsel %vm88_vm2, 0.0, %v100_v3 }
  0xb3   :  { %v158_v5 = vadd.f32 %v146_v1, %v107_v41  ;;  %v172_v15 = vrot.slane %v109_v62, 2  ;;  %v112_v16 = vsub.f32 %v106_v12, %v87_v45  ;;  %v215_v17 = vand.u32 2147483647, %v207_v2 }
  0xb4   :  { %v147_v14 = vrot.slane %v133_v7, 1  ;;  %v197_v18 = vsel %vm168_vm3, %v194_v48, %v196_v11  ;;  %v130_v20 = vadd.f32 %v124_v0, %v106_v12  ;;  %v105_v21 = vsel %vm88_vm2, 0.0, %v98_v8 }
  0xb5   :  { %v183_v13 = vadd.f32 %v171_v9, %v158_v5  ;;  %v208_v24 = vsub.f32 %v397_v40, %v197_v18  ;;  %v136_v25 = vmul.f32 2.0, %v112_v16  ;;  %v111_v27 = vsub.f32 %v105_v21, %v86_v46 }
  0xb6   :  { %v148_v23 = vsel %vm143_vm4, %v145_v56, %v147_v14  ;;  %v173_v29 = vsel %vm168_vm3, %v170_v52, %v172_v15  ;;  %v201_v30 = vrot.slane %v130_v20, 2  ;;  %v129_v31 = vadd.f32 %v123_v4, %v105_v21 }
  0xb7   :  { %v211_v22 = vand.u32 2147483647, %v183_v13  ;;  %v159_v26 = vadd.f32 %v148_v23, %v108_v39  ;;  %v152_v33 = vrot.slane %v136_v25, 1  ;;  %v135_v34 = vmul.f32 2.0, %v111_v27 }
  0xb8   :  { %v149_v35 = vrot.slane %v134_v10, 1  ;;  %v177_v36 = vrot.slane %v112_v16, 2  ;;  %v199_v37 = vrot.slane %v129_v31, 2  ;;  %v216_v41 = vand.u32 2147483647, %v208_v24 }
  0xb9   :  { %v219_v28 = vadd.f32 %v215_v17, %v211_v22  ;;  %v184_v32 = vadd.f32 %v173_v29, %v159_v26  ;;  %v150_v42 = vrot.slane %v135_v34, 1  ;;  %v175_v40 = vrot.slane %v111_v27, 2 }
  0xba   :  { %v174_v43 = vrot.slane %v110_v59, 2  ;;  %v200_v39 = vsel %vm168_vm3, %v198_v19, %v199_v37  ;;  %v202_v44 = vsel %vm168_vm3, %v199_v37, %v201_v30 }
  0xbb   :  { %223 = vst [vmem:[#allocation7] sm:$0xff] %v219_v28  ;;  %v212_v38 = vand.u32 2147483647, %v184_v32  ;;  %v151_v46 = vsel %vm143_vm4, %v149_v35, %v150_v42  ;;  %v153_v47 = vsel %vm143_vm4, %v150_v42, %v152_v33  ;;  %v209_v48 = vsub.f32 %v128_v6, %v200_v39 }
  0xbc   :  { %v160_v49 = vadd.f32 %v151_v46, %v110_v59  ;;  %v161_v50 = vadd.f32 %v153_v47, %v111_v27  ;;  %v210_v51 = vsub.f32 %v129_v31, %v202_v44  ;;  %v176_v52 = vsel %vm168_vm3, %v174_v43, %v175_v40 }
  0xbd   :  { %v220_v45 = vadd.f32 %v216_v41, %v212_v38  ;;  %v178_v53 = vsel %vm168_vm3, %v175_v40, %v177_v36  ;;  %v217_v56 = vand.u32 2147483647, %v209_v48 }
  0xbe   :  { %v185_v54 = vadd.f32 %v176_v52, %v160_v49  ;;  %v186_v55 = vadd.f32 %v178_v53, %v161_v50  ;;  %v218_v60 = vand.u32 2147483647, %v210_v51 }
  0xbf   :  { %224 = vst [vmem:[#allocation7 + $0x8] sm:$0xff] %v220_v45 }
  0xc0   :  { %v213_v57 = vand.u32 2147483647, %v185_v54  ;;  %v214_v58 = vand.u32 2147483647, %v186_v55 }
  0xc2   :  { %v222_v61 = vadd.f32 %v218_v60, %v214_v58  ;;  %v221_v62 = vadd.f32 %v217_v56, %v213_v57 }
  0xc4   :  { %226 = vst [vmem:[#allocation7 + $0x18] sm:$0xff] %v222_v61  ;;  %225 = vst [vmem:[#allocation7 + $0x10] sm:$0xff] %v221_v62 }
  0xc5   :  { %309 = shalt.err (!%p306_p6)
}
  0xc6   :  { %s310_s14 = scalar_lea.hbm %s444_s2, 512 }
  0xc7   :  { %p311_p7 = scmp.ne.s32.totalorder %s444_s2, %s310_s14  ;;  %p314_p8 = scmp.lt.u32.totalorder %s310_s14, %s444_s2 }
  0xc9   :  { %p316_p9 = pnand %p314_p8, %p311_p7 }
  0xcb   :  { %319 = shalt.err (!%p316_p9)
}
  0xcc   :  { %238 = dma.vmem_to_hbm [thread:$0]  %s233_s10, 512, %s444_s2, [#allocation4], %s327_s19, %s327_s19, %s328_s20  }
  0xcd   :  { %324 = dma.done.wait [#allocation4], 512  }
  0xce   :  { %325 = vsyncadd [#allocation4], 4294966784 }
  0xcf   :  { %242 = vsyncpa [#allocation3], 1 }
  0xd0   :  { %243 = vsyncpa [#allocation6], 1 }
  0xd1   :  { %244 = vsyncpa [#allocation4], 1 }

</bundles_post_ra>
